<compile_context>
chip_gen: v7x
topology: tpu7x:2x2x1
jax: 0.10.0
libtpu: 0.0.40
codegen_flags: <defaults>
</compile_context>

<pallas_src>
import jax
import jax.numpy as jnp
from jax.experimental import pallas as pl
from jax.experimental.pallas import tpu as pltpu

OUT_LANES = 128  # lane-dense output slab width


def make_policy_kernel(action_space):
    A = action_space

    def policy_kernel(x_ref, w1_ref, b1_ref, w2_ref, b2_ref, w3_ref, b3_ref,
                      out_ref):
        x = x_ref[...]

        # fused layer 1: (TB, S) @ (S, 2H) -> (TB, 2H)
        h = jnp.dot(x, w1_ref[...], preferred_element_type=jnp.float32) + b1_ref[...]
        h = jnp.maximum(h, 0.0)

        # fused (block-diagonal) layer 2: (TB, 2H) @ (2H, 2H) -> (TB, 2H)
        h = jnp.dot(h, w2_ref[...], preferred_element_type=jnp.float32) + b2_ref[...]
        h = jnp.maximum(h, 0.0)

        # fused, lane-padded layer 3: (TB, 2H) @ (2H, 128) -> (TB, 128)
        # lanes [0:A]   -> actor logits
        # lane  A       -> critic value
        # lanes [A+1:)  -> exactly zero (padded weight/bias columns)
        z = jnp.dot(h, w3_ref[...], preferred_element_type=jnp.float32) + b3_ref[...]

        # masked softmax over the actor lanes only
        lane = jax.lax.broadcasted_iota(jnp.int32, z.shape, 1)
        is_actor = lane < A
        m = jnp.max(jnp.where(is_actor, z, -jnp.inf), axis=-1, keepdims=True)
        e = jnp.where(is_actor, jnp.exp(z - m), 0.0)
        s = jnp.sum(e, axis=-1, keepdims=True)
        probs = e * pl.reciprocal(s, approx=False)

        # single lane-dense store: probs in [0:A], value at lane A, zeros after
        out_ref[...] = jnp.where(lane == A, z, probs)

    return policy_kernel


def pack_params(p, hidden_size, action_space, out_lanes=OUT_LANES):
    """Pack raw per-layer params into fused block-diagonal slabs."""
    H, A = hidden_size, action_space
    w1 = jnp.concatenate([p["w1_a"], p["w1_c"]], axis=1)        # (S, 2H)
    b1 = jnp.concatenate([p["b1_a"], p["b1_c"]], axis=1)        # (1, 2H)

    w2 = jnp.zeros((2 * H, 2 * H), jnp.float32)                 # block-diag (2H, 2H)
    w2 = w2.at[:H, :H].set(p["w2_a"]).at[H:, H:].set(p["w2_c"])
    b2 = jnp.concatenate([p["b2_a"], p["b2_c"]], axis=1)        # (1, 2H)

    w3 = jnp.zeros((2 * H, out_lanes), jnp.float32)             # block-diag, lane-padded
    w3 = w3.at[:H, :A].set(p["w3_a"]).at[H:, A:A + 1].set(p["w3_c"])
    b3 = jnp.zeros((1, out_lanes), jnp.float32)
    b3 = b3.at[:, :A].set(p["b3_a"]).at[:, A:A + 1].set(p["b3_c"])
    return dict(w1=w1, b1=b1, w2=w2, b2=b2, w3=w3, b3=b3)


def policy_forward(x, fused, action_space):
    """Returns (action_probs, value). The torch Categorical wrapper has no
    tensor semantics beyond holding `action_probs`, so probs are returned."""
    B, S = x.shape
    A = action_space

    # Batch tiling: a single block for small B; parallel batch tiles for
    # large B (second TensorCore on v7x). Weights stay VMEM-resident.
    TB = B if B <= 128 else 128
    assert B % TB == 0, "batch must be divisible by the batch tile"
    grid = (B // TB,)

    weight_args = (fused["w1"], fused["b1"], fused["w2"], fused["b2"],
                   fused["w3"], fused["b3"])
    weight_specs = [pl.BlockSpec(w.shape, lambda i: (0, 0)) for w in weight_args]

    out = pl.pallas_call(
        make_policy_kernel(A),
        out_shape=jax.ShapeDtypeStruct((B, OUT_LANES), jnp.float32),
        grid=grid,
        in_specs=[pl.BlockSpec((TB, S), lambda i: (i, 0))] + weight_specs,
        out_specs=pl.BlockSpec((TB, OUT_LANES), lambda i: (i, 0)),
        compiler_params=pltpu.CompilerParams(
            dimension_semantics=("parallel",)),
    )(x, *weight_args)

    probs = out[:, :A]
    value = out[:, A:A + 1]
    return probs, value


def init_params(key, state_space, action_space, hidden_size=32):
    """Mirror Policy.init_weights: weight ~ N(0, 0.1), bias = 0.
    Weights stored as (in, out); biases as (1, out) for 2-D TPU layout."""
    ks = jax.random.split(key, 6)

    def lin(k, fin, fout):
        w = 0.1 * jax.random.normal(k, (fin, fout), dtype=jnp.float32)
        b = jnp.zeros((1, fout), dtype=jnp.float32)
        return w, b

    w1a, b1a = lin(ks[0], state_space, hidden_size)
    w2a, b2a = lin(ks[1], hidden_size, hidden_size)
    w3a, b3a = lin(ks[2], hidden_size, action_space)
    w1c, b1c = lin(ks[3], state_space, hidden_size)
    w2c, b2c = lin(ks[4], hidden_size, hidden_size)
    w3c, b3c = lin(ks[5], hidden_size, 1)
    return dict(w1_a=w1a, b1_a=b1a, w2_a=w2a, b2_a=b2a, w3_a=w3a, b3_a=b3a,
                w1_c=w1c, b1_c=b1c, w2_c=w2c, b2_c=b2c, w3_c=w3c, b3_c=b3c)


def reference_forward(x, p):
    """Pure-JAX reference (unfused) for correctness check."""
    relu = lambda a: jnp.maximum(a, 0.0)
    ha = relu(x @ p["w1_a"] + p["b1_a"])
    ha = relu(ha @ p["w2_a"] + p["b2_a"])
    logits = ha @ p["w3_a"] + p["b3_a"]
    probs = jax.nn.softmax(logits, axis=-1)
    hc = relu(x @ p["w1_c"] + p["b1_c"])
    hc = relu(hc @ p["w2_c"] + p["b2_c"])
    value = hc @ p["w3_c"] + p["b3_c"]
    return probs, value


if __name__ == "__main__":
    key = jax.random.PRNGKey(0)
    state_space, action_space, hidden_size, batch = 4, 2, 32, 8

    k_param, k_x = jax.random.split(key)
    params = init_params(k_param, state_space, action_space, hidden_size)
    fused = pack_params(params, hidden_size, action_space)
    x = jax.random.normal(k_x, (batch, state_space), dtype=jnp.float32)

    probs, value = policy_forward(x, fused, action_space)
    probs, value = jax.block_until_ready((probs, value))

    ref_probs, ref_value = reference_forward(x, params)
    assert probs.shape == (batch, action_space)
    assert value.shape == (batch, 1)
    assert jnp.allclose(probs, ref_probs, atol=1e-5, rtol=1e-5)
    assert jnp.allclose(value, ref_value, atol=1e-5, rtol=1e-5)
    # TODO(synk): torch.distributions.Categorical has no Pallas equivalent;
    # its defining tensor (action_probs) is returned instead.
    print("KERNEL_OK")
</pallas_src>

<mosaic_0001>
module attributes {stable_mosaic.version = 11 : i64} {
  func.func @policy_kernel(%arg0: i32, %arg1: memref<8x4xf32, #tpu.memory_space<vmem>>, %arg2: memref<4x64xf32, #tpu.memory_space<vmem>>, %arg3: memref<1x64xf32, #tpu.memory_space<vmem>>, %arg4: memref<64x64xf32, #tpu.memory_space<vmem>>, %arg5: memref<1x64xf32, #tpu.memory_space<vmem>>, %arg6: memref<64x128xf32, #tpu.memory_space<vmem>>, %arg7: memref<1x128xf32, #tpu.memory_space<vmem>>, %arg8: memref<8x128xf32, #tpu.memory_space<vmem>>) attributes {dimension_semantics = [#tpu.dimension_semantics<parallel>], iteration_bounds = array<i64: 1>, scalar_prefetch = 0 : i64, scratch_operands = 0 : i64, tpu.core_type = #tpu.core_type<tc>, window_params = [{transform_indices = @transform_0, window_bounds = array<i64: 8, 4>}, {pipeline_mode = #tpu.pipeline_mode<synchronous>, transform_indices = @transform_1, window_bounds = array<i64: 4, 64>}, {pipeline_mode = #tpu.pipeline_mode<synchronous>, transform_indices = @transform_2, window_bounds = array<i64: 1, 64>}, {pipeline_mode = #tpu.pipeline_mode<synchronous>, transform_indices = @transform_3, window_bounds = array<i64: 64, 64>}, {pipeline_mode = #tpu.pipeline_mode<synchronous>, transform_indices = @transform_4, window_bounds = array<i64: 1, 64>}, {pipeline_mode = #tpu.pipeline_mode<synchronous>, transform_indices = @transform_5, window_bounds = array<i64: 64, 128>}, {pipeline_mode = #tpu.pipeline_mode<synchronous>, transform_indices = @transform_6, window_bounds = array<i64: 1, 128>}, {transform_indices = @transform_7, window_bounds = array<i64: 8, 128>}]} {
    %c0 = arith.constant 0 : index
    %c0_0 = arith.constant 0 : index
    %0 = vector.load %arg1[%c0, %c0_0] : memref<8x4xf32, #tpu.memory_space<vmem>>, vector<8x4xf32>
    %c0_1 = arith.constant 0 : index
    %c0_2 = arith.constant 0 : index
    %1 = vector.load %arg2[%c0_1, %c0_2] : memref<4x64xf32, #tpu.memory_space<vmem>>, vector<4x64xf32>
    %cst = arith.constant dense<0.000000e+00> : vector<8x64xf32>
    %2 = tpu.matmul %0, %1, %cst {dimension_numbers = #tpu.dot_dimension_numbers<[1], [0], [0], [1], [0, 0, 1, 1], [], []>} : vector<8x4xf32>, vector<4x64xf32>, vector<8x64xf32> -> vector<8x64xf32>
    %c0_3 = arith.constant 0 : index
    %c0_4 = arith.constant 0 : index
    %3 = vector.load %arg3[%c0_3, %c0_4] : memref<1x64xf32, #tpu.memory_space<vmem>>, vector<1x64xf32>
    %4 = vector.broadcast %3 : vector<1x64xf32> to vector<8x64xf32>
    %5 = arith.addf %2, %4 : vector<8x64xf32>
    %cst_5 = arith.constant 0.000000e+00 : f32
    %6 = vector.broadcast %cst_5 : f32 to vector<8x64xf32>
    %7 = arith.maximumf %5, %6 : vector<8x64xf32>
    %c0_6 = arith.constant 0 : index
    %c0_7 = arith.constant 0 : index
    %8 = vector.load %arg4[%c0_6, %c0_7] : memref<64x64xf32, #tpu.memory_space<vmem>>, vector<64x64xf32>
    %cst_8 = arith.constant dense<0.000000e+00> : vector<8x64xf32>
    %9 = tpu.matmul %7, %8, %cst_8 {dimension_numbers = #tpu.dot_dimension_numbers<[1], [0], [0], [1], [0, 0, 1, 1], [], []>} : vector<8x64xf32>, vector<64x64xf32>, vector<8x64xf32> -> vector<8x64xf32>
    %c0_9 = arith.constant 0 : index
    %c0_10 = arith.constant 0 : index
    %10 = vector.load %arg5[%c0_9, %c0_10] : memref<1x64xf32, #tpu.memory_space<vmem>>, vector<1x64xf32>
    %11 = vector.broadcast %10 : vector<1x64xf32> to vector<8x64xf32>
    %12 = arith.addf %9, %11 : vector<8x64xf32>
    %cst_11 = arith.constant 0.000000e+00 : f32
    %13 = vector.broadcast %cst_11 : f32 to vector<8x64xf32>
    %14 = arith.maximumf %12, %13 : vector<8x64xf32>
    %c0_12 = arith.constant 0 : index
    %c0_13 = arith.constant 0 : index
    %15 = vector.load %arg6[%c0_12, %c0_13] : memref<64x128xf32, #tpu.memory_space<vmem>>, vector<64x128xf32>
    %cst_14 = arith.constant dense<0.000000e+00> : vector<8x128xf32>
    %16 = tpu.matmul %14, %15, %cst_14 {dimension_numbers = #tpu.dot_dimension_numbers<[1], [0], [0], [1], [0, 0, 1, 1], [], []>} : vector<8x64xf32>, vector<64x128xf32>, vector<8x128xf32> -> vector<8x128xf32>
    %c0_15 = arith.constant 0 : index
    %c0_16 = arith.constant 0 : index
    %17 = vector.load %arg7[%c0_15, %c0_16] : memref<1x128xf32, #tpu.memory_space<vmem>>, vector<1x128xf32>
    %18 = vector.broadcast %17 : vector<1x128xf32> to vector<8x128xf32>
    %19 = arith.addf %16, %18 : vector<8x128xf32>
    %20 = tpu.iota {dimensions = array<i32: 1>} : vector<8x128xi32>
    %c2_i32 = arith.constant 2 : i32
    %21 = vector.broadcast %c2_i32 : i32 to vector<8x128xi32>
    %22 = arith.cmpi slt, %20, %21 : vector<8x128xi32>
    %cst_17 = arith.constant 0xFF800000 : f32
    %23 = vector.broadcast %cst_17 : f32 to vector<8x128xf32>
    %24 = arith.select %22, %19, %23 : vector<8x128xi1>, vector<8x128xf32>
    %cst_18 = arith.constant dense<0xFF800000> : vector<8xf32>
    %25 = vector.multi_reduction <maximumf>, %24, %cst_18 [1] : vector<8x128xf32> to vector<8xf32>
    %26 = vector.shape_cast %25 : vector<8xf32> to vector<8x1xf32>
    %27 = vector.broadcast %26 : vector<8x1xf32> to vector<8x128xf32>
    %28 = arith.subf %19, %27 : vector<8x128xf32>
    %29 = math.exp %28 : vector<8x128xf32>
    %cst_19 = arith.constant 0.000000e+00 : f32
    %30 = vector.broadcast %cst_19 : f32 to vector<8x128xf32>
    %31 = arith.select %22, %29, %30 : vector<8x128xi1>, vector<8x128xf32>
    %cst_20 = arith.constant dense<0.000000e+00> : vector<8xf32>
    %32 = vector.multi_reduction <add>, %31, %cst_20 [1] : vector<8x128xf32> to vector<8xf32>
    %33 = vector.shape_cast %32 : vector<8xf32> to vector<8x1xf32>
    %34 = tpu.reciprocal %33 : vector<8x1xf32> -> vector<8x1xf32>
    %35 = vector.broadcast %34 : vector<8x1xf32> to vector<8x128xf32>
    %36 = arith.mulf %31, %35 : vector<8x128xf32>
    %c2_i32_21 = arith.constant 2 : i32
    %37 = vector.broadcast %c2_i32_21 : i32 to vector<8x128xi32>
    %38 = arith.cmpi eq, %20, %37 : vector<8x128xi32>
    %39 = arith.select %38, %19, %36 : vector<8x128xi1>, vector<8x128xf32>
    %c0_22 = arith.constant 0 : index
    %c0_23 = arith.constant 0 : index
    %40 = vector.load %arg8[%c0_22, %c0_23] : memref<8x128xf32, #tpu.memory_space<vmem>>, vector<8x128xf32>
    tpu.vector_store %arg8[%c0_22, %c0_23], %39 {strides = array<i32>} : memref<8x128xf32, #tpu.memory_space<vmem>>, vector<8x128xf32>,
    return
  }
  func.func @transform_0(%arg0: i32) -> (i32, i32) {
    %c0_i32 = arith.constant 0 : i32
    %c0_i32_0 = arith.constant 0 : i32
    return %arg0, %c0_i32 : i32, i32
  }
  func.func @transform_1(%arg0: i32) -> (i32, i32) {
    %c0_i32 = arith.constant 0 : i32
    %c0_i32_0 = arith.constant 0 : i32
    %c0_i32_1 = arith.constant 0 : i32
    return %c0_i32, %c0_i32_0 : i32, i32
  }
  func.func @transform_2(%arg0: i32) -> (i32, i32) {
    %c0_i32 = arith.constant 0 : i32
    %c0_i32_0 = arith.constant 0 : i32
    %c0_i32_1 = arith.constant 0 : i32
    return %c0_i32, %c0_i32_0 : i32, i32
  }
  func.func @transform_3(%arg0: i32) -> (i32, i32) {
    %c0_i32 = arith.constant 0 : i32
    %c0_i32_0 = arith.constant 0 : i32
    %c0_i32_1 = arith.constant 0 : i32
    return %c0_i32, %c0_i32_0 : i32, i32
  }
  func.func @transform_4(%arg0: i32) -> (i32, i32) {
    %c0_i32 = arith.constant 0 : i32
    %c0_i32_0 = arith.constant 0 : i32
    %c0_i32_1 = arith.constant 0 : i32
    return %c0_i32, %c0_i32_0 : i32, i32
  }
  func.func @transform_5(%arg0: i32) -> (i32, i32) {
    %c0_i32 = arith.constant 0 : i32
    %c0_i32_0 = arith.constant 0 : i32
    %c0_i32_1 = arith.constant 0 : i32
    return %c0_i32, %c0_i32_0 : i32, i32
  }
  func.func @transform_6(%arg0: i32) -> (i32, i32) {
    %c0_i32 = arith.constant 0 : i32
    %c0_i32_0 = arith.constant 0 : i32
    %c0_i32_1 = arith.constant 0 : i32
    return %c0_i32, %c0_i32_0 : i32, i32
  }
  func.func @transform_7(%arg0: i32) -> (i32, i32) {
    %c0_i32 = arith.constant 0 : i32
    %c0_i32_0 = arith.constant 0 : i32
    return %arg0, %c0_i32 : i32, i32
  }
}

</mosaic_0001>

<bundles_post_ra>
// kernel: tpu_custom_call.1
= control target key start
LH: loop header
LB: loop body
LE: loop exit
PB: predicated region body
PF: predicated region fallthrough
CT: control target
= control target key end

     0   :  { %12 = vsyncpa [#allocation3], 0  ;;  %s634_s0 = inlined_call_operand.vmem [shape: f32[8,4], index: 0, kind: input, shape index: {}]   ;;  %s635_s1 = inlined_call_operand.vmem [shape: f32[4,64], index: 1, kind: input, shape index: {}]   ;;  %s636_s2 = inlined_call_operand.vmem [shape: f32[1,64], index: 2, kind: input, shape index: {}]   ;;  %s637_s3 = inlined_call_operand.hbm [shape: f32[64,64], index: 3, kind: input, shape index: {}]   ;;  %s638_s4 = inlined_call_operand.vmem [shape: f32[1,64], index: 4, kind: input, shape index: {}]   ;;  %s639_s5 = inlined_call_operand.hbm [shape: f32[64,128], index: 5, kind: input, shape index: {}]   ;;  %s640_s6 = inlined_call_operand.vmem [shape: f32[1,128], index: 6, kind: input, shape index: {}]   ;;  %s641_s7 = inlined_call_operand.hbm [shape: f32[8,128], index: 7, kind: output, shape index: {}]  }
   0x1   :  { %13 = vsyncpa [#allocation6], 0 }
   0x2   :  { %14 = vsyncpa [#allocation4], 0  ;;  %s532_s24 = smov [#allocation2]   ;;  %s460_s28 = scalar_lea.hbm %s637_s3, 1024 }
   0x3   :  { %s26_s25 = sshll.u32 %s532_s24, 4  ;;  %p461_p0 = scmp.ne.s32.totalorder %s637_s3, %s460_s28  ;;  %s27_s25 = int_to_ptr.vmem [resolvable:$true] %s26_s25 }
   0x4   :  { %p464_p1 = scmp.lt.u32.totalorder %s460_s28, %s637_s3 }
   0x6   :  { %p466_p2 = pnand %p464_p1, %p461_p0 }
   0x8   :  { %469 = shalt.err (!%p466_p2)
}
   0x9   :  { %s470_s10 = scalar_lea.vmem %s27_s25, 1024  ;;  %p475_p4 = scmp.lt.s32.totalorder %s27_s25, %s27_s25 }
   0xa   :  { %p471_p3 = scmp.ne.s32.totalorder %s27_s25, %s470_s10  ;;  %p476_p5 = scmp.lt.s32.totalorder %s470_s10, %s470_s10 }
   0xc   :  { %p477_p6 = por %p476_p5, %p475_p4 }
   0xe   :  { %p478_p7 = pnand %p477_p6, %p471_p3 }
  0x10   :  { %481 = shalt.err (!%p478_p7)
}
  0x11   :  { %s533_s11 = smov 128   ;;  %s534_s12 = smov 8  }
  0x12   :  { %32 = dma.hbm_to_vmem [thread:$0]  %s637_s3, 1024, %s27_s25, [#allocation3], %s533_s11, %s533_s11, %s534_s12  }
  0x13   :  { %s535_s15 = smov [#allocation5]   ;;  %s482_s19 = scalar_lea.hbm %s639_s5, 1024 }
  0x14   :  { %s40_s16 = sshll.u32 %s535_s15, 4  ;;  %p483_p8 = scmp.ne.s32.totalorder %s639_s5, %s482_s19  ;;  %s41_s16 = int_to_ptr.vmem [resolvable:$true] %s40_s16 }
  0x15   :  { %p486_p9 = scmp.lt.u32.totalorder %s482_s19, %s639_s5 }
  0x17   :  { %p488_p10 = pnand %p486_p9, %p483_p8 }
  0x19   :  { %491 = shalt.err (!%p488_p10)
}
  0x1a   :  { %s492_s24 = scalar_lea.vmem %s41_s16, 1024  ;;  %p497_p12 = scmp.lt.s32.totalorder %s41_s16, %s41_s16 }
  0x1b   :  { %p493_p11 = scmp.ne.s32.totalorder %s41_s16, %s492_s24  ;;  %p498_p13 = scmp.lt.s32.totalorder %s492_s24, %s492_s24 }
  0x1d   :  { %p499_p0 = por %p498_p13, %p497_p12 }
  0x1f   :  { %p500_p1 = pnand %p499_p0, %p493_p11 }
  0x21   :  { %503 = shalt.err (!%p500_p1)
}
  0x22   :  { %46 = dma.hbm_to_vmem [thread:$0]  %s639_s5, 1024, %s41_s16, [#allocation6], %s533_s11, %s533_s11, %s534_s12  }
  0x23   :  { %526 = dma.done.wait [#allocation3], 1024  }
  0x24   :  { %527 = vsyncadd [#allocation3], 4294966272 }
  0x25   :  { %528 = dma.done.wait [#allocation6], 1024  }
  0x26   :  { %529 = vsyncadd [#allocation6], 4294966272  ;;  %v536_v0 = vmov 0.0   ;;  %vm537_vm0 = vmmov 0   ;;  %v538_v1 = vmov 0.0|0.0   ;;  %vm68_vm1 = vcmask 1043456  }
  0x27   :  { %381 = vmatprep.subr.mxu0 %v536_v0  ;;  %383 = vmatprep.mubr.msk.f32.mxu0 %vm537_vm0, %v536_v0  ;;  %vm64_vm2 = vcmask 31744   ;;  %v56_v2 = vld [vmem:[%s635_s1] sm:$0xf]  ;;  %v144_v5 = vld [vmem:[#allocation2 + $0x8] sm:$0xff]  ;;  %v145_v6 = vld [vmem:[#allocation2 + $0x10] sm:$0xff]  ;;  %vm158_vm3 = vcmask 523264   ;;  %v321_v38 = vlaneseq }
  0x28   :  { %424 = vmatprep.subr.bf16.mxu1 %v538_v1  ;;  %402 = vmatprep.mubr.msk.f32.mxu1 %vm537_vm0, %v536_v0  ;;  %v55_v3 = vld [vmem:[%s634_s0] sm:$0xff]  ;;  %v146_v7 = vld [vmem:[#allocation2 + $0x18] sm:$0xff]  ;;  %v148_v11 = vld [vmem:[#allocation2 + $0x28] sm:$0xff] }
  0x29   :  { %v143_v4 = vld [vmem:[#allocation2] sm:$0xff]  ;;  %382 = vmatpush3.msk.msra.mxu0 %vm68_vm1, %v56_v2  ;;  %v428_v9 = vpack.c.bf16 %v146_v7, %v145_v6  ;;  %v149_v13 = vld [vmem:[#allocation2 + $0x30] sm:$0xff]  ;;  %v150_v14 = vld [vmem:[#allocation2 + $0x38] sm:$0xff]  ;;  %v322_v39 = vand.u32 127, %v321_v38 }
  0x2a   :  { %384 = vmatmul.mubr.msk.f32.vlgmr.msra.gmra.mrb[0].mxu0 %vm64_vm2, %v55_v3  ;;  %v425_v8 = vpack.c.bf16 %v144_v5, %v143_v4  ;;  %436 = vmatprep.subr.bf16.mxu0 %v538_v1  ;;  %v147_v10 = vld [vmem:[#allocation2 + $0x20] sm:$0xff]  ;;  %v434_v15 = vpack.c.bf16 %v150_v14, %v149_v13  ;;  %v234_v17 = vld [vmem:[#allocation5 + $0x8] sm:$0xff]  ;;  %v235_v18 = vld [vmem:[#allocation5 + $0x10] sm:$0xff] }
  0x2b   :  { %421 = vmatprep.mubr.msk.f32.mxu0 %vm537_vm0, %v536_v0  ;;  %v431_v12 = vpack.c.bf16 %v148_v11, %v147_v10  ;;  %v233_v16 = vld [vmem:[#allocation5] sm:$0xff]  ;;  %v236_v20 = vld [vmem:[#allocation5 + $0x18] sm:$0xff]  ;;  %v238_v23 = vld [vmem:[#allocation5 + $0x28] sm:$0xff]  ;;  %vm323_vm4 = vcmp.lt.s32.totalorder %v322_v39, 2  ;;  %vm335_vm5 = vcmp.eq.s32.totalorder %v322_v39, 2 }
  0x2c   :  { %426 = vmatpush3.bf16.msra.mxu1 %v425_v8  ;;  %v437_v19 = vpack.c.bf16 %v234_v17, %v233_v16  ;;  %v440_v21 = vpack.c.bf16 %v236_v20, %v235_v18  ;;  %v237_v22 = vld [vmem:[#allocation5 + $0x20] sm:$0xff]  ;;  %v239_v30 = vld [vmem:[#allocation5 + $0x30] sm:$0xff]  ;;  %v240_v31 = vld [vmem:[#allocation5 + $0x38] sm:$0xff] }
  0x2d   :  { %427 = vmatprep.subr.bf16.mxu1 %v538_v1  ;;  %v443_v24 = vpack.c.bf16 %v238_v23, %v237_v22  ;;  %v354_v25 = vld [vmem:[%s636_s2] ss:$0 sm:$0xff]  ;;  %v446_v32 = vpack.c.bf16 %v240_v31, %v239_v30 }
  0x2e   :  { %438 = vmatpush3.bf16.msra.mxu0 %v437_v19  ;;  %v357_v33 = vld [vmem:[%s638_s4] ss:$0 sm:$0xff]  ;;  %s539_s4 = smov [#allocation7]  }
  0x2f   :  { %439 = vmatprep.subr.bf16.mxu0 %v538_v1  ;;  %v359_v40 = vld [vmem:[%s640_s6] ss:$0 sm:$0xff]  ;;  %s344_s9 = sshll.u32 %s539_s4, 4  ;;  %s345_s9 = int_to_ptr.vmem [resolvable:$true] %s344_s9 }
  0x30   :  { %429 = vmatpush3.bf16.msra.mxu1 %v428_v9  ;;  %s504_s6 = scalar_lea.vmem %s345_s9, 128  ;;  %p509_p3 = scmp.lt.s32.totalorder %s345_s9, %s345_s9 }
  0x31   :  { %430 = vmatprep.subr.bf16.mxu1 %v538_v1  ;;  %p505_p2 = scmp.ne.s32.totalorder %s345_s9, %s504_s6  ;;  %p510_p4 = scmp.lt.s32.totalorder %s504_s6, %s504_s6 }
  0x32   :  { %441 = vmatpush3.bf16.msra.mxu0 %v440_v21 }
  0x33   :  { %442 = vmatprep.subr.bf16.mxu0 %v538_v1  ;;  %p511_p5 = por %p510_p4, %p509_p3 }
  0x34   :  { %432 = vmatpush3.bf16.msra.mxu1 %v431_v12 }
  0x35   :  { %433 = vmatprep.subr.bf16.mxu1 %v538_v1  ;;  %p512_p6 = pnand %p511_p5, %p505_p2 }
  0x36   :  { %444 = vmatpush3.bf16.msra.mxu0 %v443_v24 }
  0x37   :  { %445 = vmatprep.subr.bf16.mxu0 %v538_v1 }
  0x38   :  { %435 = vmatpush3.bf16.msra.mxu1 %v434_v15 }
  0x3a   :  { %447 = vmatpush3.bf16.msra.mxu0 %v446_v32 }
  0xfd   :  { %v138_v26 = vpop.f32.mrb[0].mxu0 }
  0xfe   :  { %v139_v27 = vadd.f32 %v354_v25, %v138_v26  ;;  %v385_v28 = vpop.f32.mrb[1].mxu0 }
 0x100   :  { %v142_v29 = vmax.f32 %v139_v27, 0.0 }
 0x102   :  { %403 = vmatmul.mubr.msk.f32.vlgmr.msra.gmra.mrb[0].mxu1 %vm158_vm3, %v142_v29 }
 0x1d5   :  { %v228_v34 = vpop.f32.mrb[0].mxu1 }
 0x1d6   :  { %v229_v35 = vadd.f32 %v357_v33, %v228_v34  ;;  %v404_v36 = vpop.f32.mrb[1].mxu1 }
 0x1d8   :  { %v232_v37 = vmax.f32 %v229_v35, 0.0 }
 0x1da   :  { %422 = vmatmul.mubr.msk.f32.vlgmr.msra.gmra.mrb[2].mxu0 %vm158_vm3, %v232_v37 }
 0x2ad   :  { %v317_v41 = vpop.f32.mrb[2].mxu0 }
 0x2ae   :  { %v318_v42 = vadd.f32 %v359_v40, %v317_v41  ;;  %v423_v43 = vpop.f32.mrb[3].mxu0 }
 0x2b0   :  { %v324_v44 = vsel %vm323_vm4, %v318_v42, -inf }
 0x2b1   :  { %325 = vmax.xlane.f32.xlu0 %v324_v44 }
 0x33e   :  { %v326_v45 = vpop.xlane.xlu0 %325 }
 0x33f   :  { %v327_v46 = vsub.f32 %v318_v42, %v326_v45 }
 0x341   :  { %v328_v47 = vmul.f32 1.442695, %v327_v46 }
 0x343   :  { %456 = vpow2.f32 %v328_v47 }
 0x34d   :  { %v457_v48 = vpop.eup %456 }
 0x34e   :  { %v330_v49 = vsel %vm323_vm4, %v457_v48, 0.0 }
 0x34f   :  { %331 = vadd.xlane.f32.xlu0 %v330_v49 }
 0x3dc   :  { %v332_v50 = vpop.xlane.xlu0 %331 }
 0x3dd   :  { %458 = vrcp.f32 %v332_v50 }
 0x3e7   :  { %v459_v51 = vpop.eup %458 }
 0x3e8   :  { %v334_v52 = vmul.f32 %v459_v51, %v330_v49 }
 0x3ea   :  { %v336_v53 = vsel %vm335_vm5, %v318_v42, %v334_v52 }
 0x3eb   :  { %337 = vst [vmem:[#allocation7] sm:$0xff] %v336_v53 }
 0x3ec   :  { %515 = shalt.err (!%p512_p6)
}
 0x3ed   :  { %s516_s12 = scalar_lea.hbm %s641_s7, 128 }
 0x3ee   :  { %p517_p7 = scmp.ne.s32.totalorder %s641_s7, %s516_s12  ;;  %p520_p8 = scmp.lt.u32.totalorder %s516_s12, %s641_s7 }
 0x3f0   :  { %p522_p9 = pnand %p520_p8, %p517_p7 }
 0x3f2   :  { %525 = shalt.err (!%p522_p9)
}
 0x3f3   :  { %347 = dma.vmem_to_hbm [thread:$0]  %s345_s9, 128, %s641_s7, [#allocation4]  }
 0x3f4   :  { %530 = dma.done.wait [#allocation4], 128  }
 0x3f5   :  { %531 = vsyncadd [#allocation4], 4294967168 }
 0x3f6   :  { %351 = vsyncpa [#allocation3], 1 }
 0x3f7   :  { %352 = vsyncpa [#allocation6], 1 }
 0x3f8   :  { %353 = vsyncpa [#allocation4], 1 }

</bundles_post_ra>
